<compile_context>
chip_gen: v7x
topology: tpu7x:2x2x1
jax: 0.10.0
libtpu: 0.0.40
codegen_flags: <defaults>
</compile_context>

<pallas_src>
import functools
import math

import jax
import jax.numpy as jnp
from jax.experimental import pallas as pl
from jax.experimental.pallas import tpu as pltpu


def _attention_kernel(skip_ref, vl_ref, q_ref, k_ref, v_ref, o_ref,
                      q_sc, m_sc, l_sc, acc_sc, *, scale, tk, seq_k, ragged_k):
    """Flash-style masked attention; grid = (batch_blocks, q_blocks, k_tiles).

    skip_ref : SMEM (nb*nq,) int32   max valid_len per (batch,q) block
    vl_ref   : VMEM (BB, TQ, 1) int32
    q_ref    : VMEM (BB, TQ, D) bf16
    k_ref    : VMEM (BB, TK, D) bf16
    v_ref    : VMEM (BB, TK, V) bf16
    o_ref    : VMEM (BB, TQ, V)
    q_sc     : VMEM (BB, TQ, D) bf16   pre-scaled queries (hoisted out of kv loop)
    m_sc/l_sc: VMEM (BB, TQ, 1) f32    running max / denominator
    acc_sc   : VMEM (BB, TQ, V) f32    running numerator
    """
    b = pl.program_id(0)
    qi = pl.program_id(1)
    kv = pl.program_id(2)
    nq = pl.num_programs(1)
    nk = pl.num_programs(2)

    @pl.when(kv == 0)
    def _init():
        # Hoist the 1/sqrt(D) scale (and any Q cast work) out of the kv loop:
        # one bb*TQ*D multiply per block instead of bb*TQ*tk per tile.
        q_sc[...] = (q_ref[...].astype(jnp.float32) * scale).astype(jnp.bfloat16)
        m_sc[...] = jnp.full(m_sc.shape, -jnp.inf, dtype=m_sc.dtype)
        l_sc[...] = jnp.zeros(l_sc.shape, dtype=l_sc.dtype)
        acc_sc[...] = jnp.zeros(acc_sc.shape, dtype=acc_sc.dtype)

    # Skip K tiles that are fully masked for every row of this block.
    blk_max = skip_ref[b * nq + qi]

    @pl.when(kv * tk < blk_max)
    def _compute():
        # scores = (scale*Q) @ K^T : bf16 MXU inputs, f32 accumulation.
        # einsum contracts last dims -> no explicit K transpose (no XLU copy).
        s = jnp.einsum("bqd,bkd->bqk", q_sc[...], k_ref[...],
                       preferred_element_type=jnp.float32)

        # masked softmax: key positions >= valid_len get -1e6 (PyTorch semantics)
        col = kv * tk + jax.lax.broadcasted_iota(jnp.int32, s.shape, dimension=2)
        s = jnp.where(col < vl_ref[...], s, jnp.float32(-1000000.0))
        if ragged_k:
            # padded (out-of-range) key columns of a ragged last tile must
            # never contribute, even for fully-masked (valid_len==0) rows.
            s = jnp.where(col < seq_k, s, -jnp.inf)

        # online-softmax update (all elementwise math in f32 on the VPU).
        m_prev = m_sc[...]
        m_new = jnp.maximum(m_prev, jnp.max(s, axis=-1, keepdims=True))
        alpha = jnp.exp(m_prev - m_new)
        p = jnp.exp(s - m_new)
        l_sc[...] = alpha * l_sc[...] + jnp.sum(p, axis=-1, keepdims=True)
        acc_sc[...] = alpha * acc_sc[...] + jnp.einsum(
            "bqk,bkv->bqv", p.astype(jnp.bfloat16), v_ref[...],
            preferred_element_type=jnp.float32)
        m_sc[...] = m_new

    @pl.when(kv == nk - 1)
    def _finalize():
        # exact division; runs once per block so it is essentially free.
        o_ref[...] = (acc_sc[...] / l_sc[...]).astype(o_ref.dtype)


def dot_product_attention(queries, keys, values, valid_lens=None):
    """Pallas wrapper. queries (B,Q,D), keys (B,K,D), values (B,K,V)."""
    B, Q, D = queries.shape
    Bk, K, Dk = keys.shape
    Bv, Kv, V = values.shape
    assert (B, D) == (Bk, Dk) and (B, K) == (Bv, Kv), "shape mismatch"

    out_dtype = queries.dtype

    # --- valid_lens normalisation (matches PyTorch masked_softmax) ---
    if valid_lens is None:
        vl = jnp.full((B, Q), K, dtype=jnp.int32)
    else:
        vl = valid_lens.astype(jnp.int32)
        if vl.ndim == 1:
            vl = jnp.broadcast_to(vl[:, None], (B, Q))
        else:
            vl = vl.reshape(B, Q)

    # --- generation-aware resource model ---
    try:
        vmem_cap = int(pltpu.get_tpu_info().vmem_capacity_bytes)
    except Exception:
        vmem_cap = 128 * 1024 * 1024
    try:
        kind = jax.devices()[0].device_kind.lower()
    except Exception:
        kind = ""
    small_vmem = vmem_cap <= 64 * 1024 * 1024           # v7x-class part
    # leave headroom: ~48 MiB on v7x, ~96 MiB (capped 112) on v5e/v6e
    vmem_limit = min((vmem_cap * 3) // 4, 112 * 1024 * 1024)
    is_v5e = ("v5" in kind and "lite" in kind) or "v5e" in kind
    m_target = 128 if is_v5e else 256                   # MXU M rows (4x128 vs 2x256)

    # --- Q tiling (parallel axis, bounds f32 temporaries / accumulator) ---
    if Q > 256 and Q % 256 == 0:
        tq = 256
    elif Q > 128 and Q % 128 == 0:
        tq = 128
    else:
        tq = Q
    nq = Q // tq

    # --- batch block: fill the MXU M dimension ---
    bb = max(1, min(B, -(-m_target // tq)))
    # keep >=2 parallel grid blocks on 2-TensorCore parts (v7x megacore)
    if (small_vmem or "v7" in kind) and B >= 2:
        while bb > 1 and (-(-B // bb)) * nq < 2:
            bb = max(1, bb // 2)

    # pad batch (instead of shrinking bb) so MXU M stays large for awkward B
    nb = -(-B // bb)
    Bp = nb * bb

    # bf16 MXU inputs: halves K/V HBM->VMEM traffic and VMEM footprint.
    q_in = queries.astype(jnp.bfloat16)
    k_in = keys.astype(jnp.bfloat16)
    v_in = values.astype(jnp.bfloat16)
    if Bp != B:
        pad = Bp - B
        q_in = jnp.concatenate([q_in, jnp.zeros((pad, Q, D), q_in.dtype)], 0)
        k_in = jnp.concatenate([k_in, jnp.zeros((pad, K, D), k_in.dtype)], 0)
        v_in = jnp.concatenate([v_in, jnp.zeros((pad, K, V), v_in.dtype)], 0)
        # padded rows: 1 valid key -> finite output, sliced off at the end
        vl = jnp.concatenate([vl, jnp.ones((pad, Q), jnp.int32)], 0)

    # --- K tile derived from a VMEM byte budget (generation aware) ---
    out_bytes = jnp.dtype(out_dtype).itemsize
    budget = vmem_limit // 2
    fixed = (2 * bb * tq * D * 2             # Q blocks (double buffered, bf16)
             + 2 * bb * tq * 128 * 4         # valid-len blocks (lane padded)
             + 2 * bb * tq * V * out_bytes   # output blocks
             + bb * tq * D * 2               # scaled-Q scratch
             + bb * tq * V * 4               # f32 accumulator scratch
             + 2 * bb * tq * 128 * 4)        # m / l scratch (lane padded)
    per_tk = (2 * bb * (D + V) * 2           # K,V tiles double buffered, bf16
              + 6 * bb * tq * 4)             # f32/int32 score temporaries
    tk = max(8, (budget - fixed) // per_tk)
    if tk >= K:
        tk = K
    else:
        tk = max(8, (tk // 8) * 8)           # (8,128) layout: sublane multiple
    nk = -(-K // tk)
    ragged_k = (K % tk) != 0
    # TODO(synk): if xprof shows exposed K/V DMA, add pipeline_mode=pl.Buffered(3)
    #             on the K/V BlockSpecs (costs one extra tile of VMEM each).

    # --- per-(batch,q) block skip thresholds, scalar-prefetched into SMEM ---
    vl_blk = vl.reshape(nb, bb, nq, tq)
    blk_max = vl_blk.max(axis=(1, 3))
    blk_min = vl_blk.min(axis=(1, 3))
    # A block containing a fully-masked row (valid_len == 0) must visit every
    # K tile so that row reproduces PyTorch's uniform -1e6 softmax exactly.
    skip_max = jnp.where(blk_min == 0, K, blk_max).astype(jnp.int32).reshape(-1)

    vl3 = vl.reshape(Bp, Q, 1)

    kernel = functools.partial(_attention_kernel,
                               scale=1.0 / math.sqrt(D),
                               tk=tk, seq_k=K, ragged_k=ragged_k)

    grid_spec = pltpu.PrefetchScalarGridSpec(
        num_scalar_prefetch=1,
        grid=(nb, nq, nk),
        in_specs=[
            pl.BlockSpec((bb, tq, 1), lambda b, q, k, sm: (b, q, 0)),   # valid lens
            pl.BlockSpec((bb, tq, D), lambda b, q, k, sm: (b, q, 0)),   # Q
            pl.BlockSpec((bb, tk, D), lambda b, q, k, sm: (b, k, 0)),   # K tile
            pl.BlockSpec((bb, tk, V), lambda b, q, k, sm: (b, k, 0)),   # V tile
        ],
        out_specs=pl.BlockSpec((bb, tq, V), lambda b, q, k, sm: (b, q, 0)),
        scratch_shapes=[
            pltpu.VMEM((bb, tq, D), jnp.bfloat16),  # pre-scaled Q
            pltpu.VMEM((bb, tq, 1), jnp.float32),   # running max m
            pltpu.VMEM((bb, tq, 1), jnp.float32),   # running denom l
            pltpu.VMEM((bb, tq, V), jnp.float32),   # running numerator
        ],
    )

    out = pl.pallas_call(
        kernel,
        out_shape=jax.ShapeDtypeStruct((Bp, Q, V), out_dtype),
        grid_spec=grid_spec,
        compiler_params=pltpu.CompilerParams(
            dimension_semantics=("parallel", "parallel", "arbitrary"),
            vmem_limit_bytes=vmem_limit,
        ),
    )(skip_max, vl3, q_in, k_in, v_in)

    return out[:B] if Bp != B else out


def _reference(queries, keys, values, valid_lens):
    """Pure-JAX reference mirroring the PyTorch semantics (f32 throughout)."""
    d = queries.shape[-1]
    scores = jnp.einsum("bqd,bkd->bqk", queries, keys) / math.sqrt(d)
    if valid_lens is not None:
        B, Q, K = scores.shape
        vlr = valid_lens
        if vlr.ndim == 1:
            vlr = jnp.broadcast_to(vlr[:, None], (B, Q))
        col = jnp.arange(K)[None, None, :]
        scores = jnp.where(col < vlr[:, :, None], scores, -1000000.0)
    weights = jax.nn.softmax(scores, axis=-1)
    return jnp.einsum("bqk,bkv->bqv", weights, values)


if __name__ == "__main__":
    key = jax.random.PRNGKey(0)
    kq, kk, kv = jax.random.split(key, 3)

    B, Q, K, D, V = 2, 8, 8, 32, 32
    queries = jax.random.normal(kq, (B, Q, D), dtype=jnp.float32)
    keys = jax.random.normal(kk, (B, K, D), dtype=jnp.float32)
    values = jax.random.normal(kv, (B, K, V), dtype=jnp.float32)

    # bf16 MXU inputs (f32 accumulate) -> compare vs f32 reference with a
    # correspondingly looser tolerance.
    TOL = dict(atol=5e-2, rtol=5e-2)

    # 1-D (per-batch) valid_lens.
    valid_lens_1d = jnp.array([3, 6], dtype=jnp.int32)
    out = jax.block_until_ready(
        dot_product_attention(queries, keys, values, valid_lens_1d))
    ref = _reference(queries, keys, values, valid_lens_1d)
    assert out.shape == (B, Q, V)
    assert jnp.allclose(out, ref, **TOL), "mismatch (1-D valid_lens)"

    # 2-D (per-query) valid_lens.
    valid_lens_2d = jnp.tile(
        jnp.arange(1, Q + 1, dtype=jnp.int32)[None, :], (B, 1))
    out2 = jax.block_until_ready(
        dot_product_attention(queries, keys, values, valid_lens_2d))
    ref2 = _reference(queries, keys, values, valid_lens_2d)
    assert jnp.allclose(out2, ref2, **TOL), "mismatch (2-D valid_lens)"

    # No mask.
    out3 = jax.block_until_ready(
        dot_product_attention(queries, keys, values, None))
    ref3 = _reference(queries, keys, values, None)
    assert jnp.allclose(out3, ref3, **TOL), "mismatch (no mask)"

    print("KERNEL_OK")
</pallas_src>

<mosaic_0001>
module attributes {stable_mosaic.version = 11 : i64} {
  func.func @_attention_kernel(%arg0: i32, %arg1: i32, %arg2: i32, %arg3: memref<1xi32, #tpu.memory_space<smem>>, %arg4: memref<2x8x1xi32, #tpu.memory_space<vmem>>, %arg5: memref<2x8x32xbf16, #tpu.memory_space<vmem>>, %arg6: memref<2x8x32xbf16, #tpu.memory_space<vmem>>, %arg7: memref<2x8x32xbf16, #tpu.memory_space<vmem>>, %arg8: memref<2x8x32xf32, #tpu.memory_space<vmem>>, %arg9: memref<2x8x32xbf16, #tpu.memory_space<vmem>>, %arg10: memref<2x8x1xf32, #tpu.memory_space<vmem>>, %arg11: memref<2x8x1xf32, #tpu.memory_space<vmem>>, %arg12: memref<2x8x32xf32, #tpu.memory_space<vmem>>) attributes {dimension_semantics = [#tpu.dimension_semantics<parallel>, #tpu.dimension_semantics<parallel>, #tpu.dimension_semantics<arbitrary>], iteration_bounds = array<i64: 1, 1, 1>, scalar_prefetch = 1 : i64, scratch_operands = 4 : i64, tpu.core_type = #tpu.core_type<tc>, window_params = [{transform_indices = @transform_0, window_bounds = array<i64: 2, 8, 1>}, {transform_indices = @transform_1, window_bounds = array<i64: 2, 8, 32>}, {transform_indices = @transform_2, window_bounds = array<i64: 2, 8, 32>}, {transform_indices = @transform_3, window_bounds = array<i64: 2, 8, 32>}, {transform_indices = @transform_4, window_bounds = array<i64: 2, 8, 32>}]} {
    %c0_i32 = arith.constant 0 : i32
    %0 = arith.cmpi eq, %arg2, %c0_i32 : i32
    %1 = arith.extui %0 : i1 to i32
    %c0_i32_0 = arith.constant 0 : i32
    %2 = arith.cmpi ne, %1, %c0_i32_0 : i32
    scf.if %2 {
      %c0 = arith.constant 0 : index
      %c0_4 = arith.constant 0 : index
      %c0_5 = arith.constant 0 : index
      %14 = vector.load %arg5[%c0, %c0_4, %c0_5] : memref<2x8x32xbf16, #tpu.memory_space<vmem>>, vector<2x8x32xbf16>
      %15 = arith.extf %14 : vector<2x8x32xbf16> to vector<2x8x32xf32>
      %cst = arith.constant 0.176776692 : f32
      %16 = vector.broadcast %cst : f32 to vector<2x8x32xf32>
      %17 = arith.mulf %15, %16 : vector<2x8x32xf32>
      %18 = arith.truncf %17 : vector<2x8x32xf32> to vector<2x8x32xbf16>
      %c0_6 = arith.constant 0 : index
      %c0_7 = arith.constant 0 : index
      %c0_8 = arith.constant 0 : index
      %19 = vector.load %arg9[%c0_6, %c0_7, %c0_8] : memref<2x8x32xbf16, #tpu.memory_space<vmem>>, vector<2x8x32xbf16>
      tpu.vector_store %arg9[%c0_6, %c0_7, %c0_8], %18 {strides = array<i32>} : memref<2x8x32xbf16, #tpu.memory_space<vmem>>, vector<2x8x32xbf16>,
      %cst_9 = arith.constant 0xFF800000 : f32
      %20 = vector.broadcast %cst_9 : f32 to vector<2x8x1xf32>
      %c0_10 = arith.constant 0 : index
      %c0_11 = arith.constant 0 : index
      %c0_12 = arith.constant 0 : index
      %21 = vector.load %arg10[%c0_10, %c0_11, %c0_12] : memref<2x8x1xf32, #tpu.memory_space<vmem>>, vector<2x8x1xf32>
      tpu.vector_store %arg10[%c0_10, %c0_11, %c0_12], %20 {strides = array<i32>} : memref<2x8x1xf32, #tpu.memory_space<vmem>>, vector<2x8x1xf32>,
      %cst_13 = arith.constant 0.000000e+00 : f32
      %22 = vector.broadcast %cst_13 : f32 to vector<2x8x1xf32>
      %c0_14 = arith.constant 0 : index
      %c0_15 = arith.constant 0 : index
      %c0_16 = arith.constant 0 : index
      %23 = vector.load %arg11[%c0_14, %c0_15, %c0_16] : memref<2x8x1xf32, #tpu.memory_space<vmem>>, vector<2x8x1xf32>
      tpu.vector_store %arg11[%c0_14, %c0_15, %c0_16], %22 {strides = array<i32>} : memref<2x8x1xf32, #tpu.memory_space<vmem>>, vector<2x8x1xf32>,
      %cst_17 = arith.constant 0.000000e+00 : f32
      %24 = vector.broadcast %cst_17 : f32 to vector<2x8x32xf32>
      %c0_18 = arith.constant 0 : index
      %c0_19 = arith.constant 0 : index
      %c0_20 = arith.constant 0 : index
      %25 = vector.load %arg12[%c0_18, %c0_19, %c0_20] : memref<2x8x32xf32, #tpu.memory_space<vmem>>, vector<2x8x32xf32>
      tpu.vector_store %arg12[%c0_18, %c0_19, %c0_20], %24 {strides = array<i32>} : memref<2x8x32xf32, #tpu.memory_space<vmem>>, vector<2x8x32xf32>,
    } else {
    }
    %c1_i32 = arith.constant 1 : i32
    %3 = arith.muli %arg0, %c1_i32 : i32
    %4 = arith.addi %3, %arg1 : i32
    %5 = arith.index_cast %4 : i32 to index
    %6 = memref.load %arg3[%5] : memref<1xi32, #tpu.memory_space<smem>>
    %c8_i32 = arith.constant 8 : i32
    %7 = arith.muli %arg2, %c8_i32 : i32
    %8 = arith.cmpi slt, %7, %6 : i32
    %9 = arith.extui %8 : i1 to i32
    %c0_i32_1 = arith.constant 0 : i32
    %10 = arith.cmpi ne, %9, %c0_i32_1 : i32
    scf.if %10 {
      %c0 = arith.constant 0 : index
      %c0_4 = arith.constant 0 : index
      %c0_5 = arith.constant 0 : index
      %14 = vector.load %arg9[%c0, %c0_4, %c0_5] : memref<2x8x32xbf16, #tpu.memory_space<vmem>>, vector<2x8x32xbf16>
      %c0_6 = arith.constant 0 : index
      %c0_7 = arith.constant 0 : index
      %c0_8 = arith.constant 0 : index
      %15 = vector.load %arg6[%c0_6, %c0_7, %c0_8] : memref<2x8x32xbf16, #tpu.memory_space<vmem>>, vector<2x8x32xbf16>
      "tpu.trace_start"() <{level = 10 : i32, message = "bqd,bkd->bqk"}> : () -> ()
      %cst = arith.constant dense<0.000000e+00> : vector<2x8x8xf32>
      %16 = tpu.matmul %14, %15, %cst {dimension_numbers = #tpu.dot_dimension_numbers<[2], [2], [1], [1], [0, 0, 0, 1, 1, 1], [0], [0]>} : vector<2x8x32xbf16>, vector<2x8x32xbf16>, vector<2x8x8xf32> -> vector<2x8x8xf32>
      "tpu.trace_stop"() : () -> ()
      %c8_i32_9 = arith.constant 8 : i32
      %17 = arith.muli %arg2, %c8_i32_9 : i32
      %18 = tpu.iota {dimensions = array<i32: 2>} : vector<2x8x8xi32>
      %19 = vector.broadcast %17 : i32 to vector<2x8x8xi32>
      %20 = arith.addi %19, %18 : vector<2x8x8xi32>
      %c0_10 = arith.constant 0 : index
      %c0_11 = arith.constant 0 : index
      %c0_12 = arith.constant 0 : index
      %21 = vector.load %arg4[%c0_10, %c0_11, %c0_12] : memref<2x8x1xi32, #tpu.memory_space<vmem>>, vector<2x8x1xi32>
      %22 = vector.broadcast %21 : vector<2x8x1xi32> to vector<2x8x8xi32>
      %23 = arith.cmpi slt, %20, %22 : vector<2x8x8xi32>
      %cst_13 = arith.constant -1.000000e+06 : f32
      %24 = vector.broadcast %cst_13 : f32 to vector<2x8x8xf32>
      %25 = arith.select %23, %16, %24 : vector<2x8x8xi1>, vector<2x8x8xf32>
      %c0_14 = arith.constant 0 : index
      %c0_15 = arith.constant 0 : index
      %c0_16 = arith.constant 0 : index
      %26 = vector.load %arg10[%c0_14, %c0_15, %c0_16] : memref<2x8x1xf32, #tpu.memory_space<vmem>>, vector<2x8x1xf32>
      %cst_17 = arith.constant dense<0xFF800000> : vector<2x8xf32>
      %27 = vector.multi_reduction <maximumf>, %25, %cst_17 [2] : vector<2x8x8xf32> to vector<2x8xf32>
      %28 = vector.shape_cast %27 : vector<2x8xf32> to vector<2x8x1xf32>
      %29 = arith.maximumf %26, %28 : vector<2x8x1xf32>
      %30 = arith.subf %26, %29 : vector<2x8x1xf32>
      %31 = math.exp %30 : vector<2x8x1xf32>
      %32 = vector.broadcast %29 : vector<2x8x1xf32> to vector<2x8x8xf32>
      %33 = arith.subf %25, %32 : vector<2x8x8xf32>
      %34 = math.exp %33 : vector<2x8x8xf32>
      %c0_18 = arith.constant 0 : index
      %c0_19 = arith.constant 0 : index
      %c0_20 = arith.constant 0 : index
      %35 = vector.load %arg11[%c0_18, %c0_19, %c0_20] : memref<2x8x1xf32, #tpu.memory_space<vmem>>, vector<2x8x1xf32>
      %36 = arith.mulf %31, %35 : vector<2x8x1xf32>
      %cst_21 = arith.constant dense<0.000000e+00> : vector<2x8xf32>
      %37 = vector.multi_reduction <add>, %34, %cst_21 [2] : vector<2x8x8xf32> to vector<2x8xf32>
      %38 = vector.shape_cast %37 : vector<2x8xf32> to vector<2x8x1xf32>
      %39 = arith.addf %36, %38 : vector<2x8x1xf32>
      %c0_22 = arith.constant 0 : index
      %c0_23 = arith.constant 0 : index
      %c0_24 = arith.constant 0 : index
      %40 = vector.load %arg11[%c0_22, %c0_23, %c0_24] : memref<2x8x1xf32, #tpu.memory_space<vmem>>, vector<2x8x1xf32>
      tpu.vector_store %arg11[%c0_22, %c0_23, %c0_24], %39 {strides = array<i32>} : memref<2x8x1xf32, #tpu.memory_space<vmem>>, vector<2x8x1xf32>,
      %c0_25 = arith.constant 0 : index
      %c0_26 = arith.constant 0 : index
      %c0_27 = arith.constant 0 : index
      %41 = vector.load %arg12[%c0_25, %c0_26, %c0_27] : memref<2x8x32xf32, #tpu.memory_space<vmem>>, vector<2x8x32xf32>
      %42 = vector.broadcast %31 : vector<2x8x1xf32> to vector<2x8x32xf32>
      %43 = arith.mulf %42, %41 : vector<2x8x32xf32>
      %44 = arith.truncf %34 : vector<2x8x8xf32> to vector<2x8x8xbf16>
      %c0_28 = arith.constant 0 : index
      %c0_29 = arith.constant 0 : index
      %c0_30 = arith.constant 0 : index
      %45 = vector.load %arg7[%c0_28, %c0_29, %c0_30] : memref<2x8x32xbf16, #tpu.memory_space<vmem>>, vector<2x8x32xbf16>
      "tpu.trace_start"() <{level = 10 : i32, message = "bqk,bkv->bqv"}> : () -> ()
      %cst_31 = arith.constant dense<0.000000e+00> : vector<2x8x32xf32>
      %46 = tpu.matmul %44, %45, %cst_31 {dimension_numbers = #tpu.dot_dimension_numbers<[2], [1], [1], [2], [0, 0, 0, 1, 1, 2], [0], [0]>} : vector<2x8x8xbf16>, vector<2x8x32xbf16>, vector<2x8x32xf32> -> vector<2x8x32xf32>
      "tpu.trace_stop"() : () -> ()
      %47 = arith.addf %43, %46 : vector<2x8x32xf32>
      %c0_32 = arith.constant 0 : index
      %c0_33 = arith.constant 0 : index
      %c0_34 = arith.constant 0 : index
      %48 = vector.load %arg12[%c0_32, %c0_33, %c0_34] : memref<2x8x32xf32, #tpu.memory_space<vmem>>, vector<2x8x32xf32>
      tpu.vector_store %arg12[%c0_32, %c0_33, %c0_34], %47 {strides = array<i32>} : memref<2x8x32xf32, #tpu.memory_space<vmem>>, vector<2x8x32xf32>,
      %c0_35 = arith.constant 0 : index
      %c0_36 = arith.constant 0 : index
      %c0_37 = arith.constant 0 : index
      %49 = vector.load %arg10[%c0_35, %c0_36, %c0_37] : memref<2x8x1xf32, #tpu.memory_space<vmem>>, vector<2x8x1xf32>
      tpu.vector_store %arg10[%c0_35, %c0_36, %c0_37], %29 {strides = array<i32>} : memref<2x8x1xf32, #tpu.memory_space<vmem>>, vector<2x8x1xf32>,
    } else {
    }
    %c0_i32_2 = arith.constant 0 : i32
    %11 = arith.cmpi eq, %arg2, %c0_i32_2 : i32
    %12 = arith.extui %11 : i1 to i32
    %c0_i32_3 = arith.constant 0 : i32
    %13 = arith.cmpi ne, %12, %c0_i32_3 : i32
    scf.if %13 {
      %c0 = arith.constant 0 : index
      %c0_4 = arith.constant 0 : index
      %c0_5 = arith.constant 0 : index
      %14 = vector.load %arg12[%c0, %c0_4, %c0_5] : memref<2x8x32xf32, #tpu.memory_space<vmem>>, vector<2x8x32xf32>
      %c0_6 = arith.constant 0 : index
      %c0_7 = arith.constant 0 : index
      %c0_8 = arith.constant 0 : index
      %15 = vector.load %arg11[%c0_6, %c0_7, %c0_8] : memref<2x8x1xf32, #tpu.memory_space<vmem>>, vector<2x8x1xf32>
      %16 = vector.broadcast %15 : vector<2x8x1xf32> to vector<2x8x32xf32>
      %17 = arith.divf %14, %16 : vector<2x8x32xf32>
      %c0_9 = arith.constant 0 : index
      %c0_10 = arith.constant 0 : index
      %c0_11 = arith.constant 0 : index
      %18 = vector.load %arg8[%c0_9, %c0_10, %c0_11] : memref<2x8x32xf32, #tpu.memory_space<vmem>>, vector<2x8x32xf32>
      tpu.vector_store %arg8[%c0_9, %c0_10, %c0_11], %17 {strides = array<i32>} : memref<2x8x32xf32, #tpu.memory_space<vmem>>, vector<2x8x32xf32>,
    } else {
    }
    return
  }
  func.func @transform_0(%arg0: i32, %arg1: i32, %arg2: i32, %arg3: memref<1xi32, #tpu.memory_space<smem>>) -> (i32, i32, i32) {
    %c0_i32 = arith.constant 0 : i32
    %c0_i32_0 = arith.constant 0 : i32
    return %arg0, %arg1, %c0_i32 : i32, i32, i32
  }
  func.func @transform_1(%arg0: i32, %arg1: i32, %arg2: i32, %arg3: memref<1xi32, #tpu.memory_space<smem>>) -> (i32, i32, i32) {
    %c0_i32 = arith.constant 0 : i32
    %c0_i32_0 = arith.constant 0 : i32
    return %arg0, %arg1, %c0_i32 : i32, i32, i32
  }
  func.func @transform_2(%arg0: i32, %arg1: i32, %arg2: i32, %arg3: memref<1xi32, #tpu.memory_space<smem>>) -> (i32, i32, i32) {
    %c0_i32 = arith.constant 0 : i32
    %c0_i32_0 = arith.constant 0 : i32
    return %arg0, %arg2, %c0_i32 : i32, i32, i32
  }
  func.func @transform_3(%arg0: i32, %arg1: i32, %arg2: i32, %arg3: memref<1xi32, #tpu.memory_space<smem>>) -> (i32, i32, i32) {
    %c0_i32 = arith.constant 0 : i32
    %c0_i32_0 = arith.constant 0 : i32
    return %arg0, %arg2, %c0_i32 : i32, i32, i32
  }
  func.func @transform_4(%arg0: i32, %arg1: i32, %arg2: i32, %arg3: memref<1xi32, #tpu.memory_space<smem>>) -> (i32, i32, i32) {
    %c0_i32 = arith.constant 0 : i32
    %c0_i32_0 = arith.constant 0 : i32
    return %arg0, %arg1, %c0_i32 : i32, i32, i32
  }
}

</mosaic_0001>

<bundles_post_ra>
// kernel: tpu_custom_call.1
= control target key start
LH: loop header
LB: loop body
LE: loop exit
PB: predicated region body
PF: predicated region fallthrough
CT: control target
= control target key end

     0   :  { %11 = vsyncpa [#allocation9], 0  ;;  %s775_s0 = inlined_call_operand.<no memory space> [shape: s32[1], index: 0, kind: input, shape index: {}]   ;;  %s776_s1 = inlined_call_operand.hbm [shape: s32[2,8,1], index: 1, kind: input, shape index: {}]   ;;  %s777_s2 = inlined_call_operand.hbm [shape: bf16[2,8,32], index: 2, kind: input, shape index: {}]   ;;  %s778_s3 = inlined_call_operand.hbm [shape: bf16[2,8,32], index: 3, kind: input, shape index: {}]   ;;  %s779_s4 = inlined_call_operand.hbm [shape: bf16[2,8,32], index: 4, kind: input, shape index: {}]   ;;  %s780_s5 = inlined_call_operand.hbm [shape: f32[2,8,32], index: 5, kind: output, shape index: {}]  }
   0x1   :  { %12 = vsyncpa [#allocation12], 0 }
   0x2   :  { %13 = vsyncpa [#allocation15], 0 }
   0x3   :  { %14 = vsyncpa [#allocation10], 0  ;;  %s617_s18 = smov [#allocation11]   ;;  %s499_s22 = scalar_lea.hbm %s777_s2, 128 }
   0x4   :  { %s32_s19 = sshll.u32 %s617_s18, 4  ;;  %p500_p0 = scmp.ne.s32.totalorder %s777_s2, %s499_s22  ;;  %s33_s19 = int_to_ptr.vmem [resolvable:$true] %s32_s19 }
   0x5   :  { %p503_p1 = scmp.lt.u32.totalorder %s499_s22, %s777_s2 }
   0x7   :  { %p505_p2 = pnand %p503_p1, %p500_p0 }
   0x9   :  { %508 = shalt.err (!%p505_p2)
}
   0xa   :  { %s509_s27 = scalar_lea.vmem %s33_s19, 128  ;;  %p514_p4 = scmp.lt.s32.totalorder %s33_s19, %s33_s19 }
   0xb   :  { %p510_p3 = scmp.ne.s32.totalorder %s33_s19, %s509_s27  ;;  %p515_p5 = scmp.lt.s32.totalorder %s509_s27, %s509_s27 }
   0xd   :  { %p516_p6 = por %p515_p5, %p514_p4 }
   0xf   :  { %p517_p7 = pnand %p516_p6, %p510_p3 }
  0x11   :  { %520 = shalt.err (!%p517_p7)
}
  0x12   :  { %s618_s28 = smov 64   ;;  %s619_s29 = smov 4  }
  0x13   :  { %38 = dma.hbm_to_vmem [thread:$0]  %s777_s2, 128, %s33_s19, [#allocation12], %s618_s28, %s618_s28, %s619_s29  }
  0x14   :  { %s620_s7 = smov [#allocation8]   ;;  %s521_s11 = scalar_lea.hbm %s776_s1, 256 }
  0x15   :  { %s20_s8 = sshll.u32 %s620_s7, 4  ;;  %p522_p8 = scmp.ne.s32.totalorder %s776_s1, %s521_s11  ;;  %s21_s8 = int_to_ptr.vmem [resolvable:$true] %s20_s8 }
  0x16   :  { %p525_p9 = scmp.lt.u32.totalorder %s521_s11, %s776_s1 }
  0x18   :  { %p527_p10 = pnand %p525_p9, %p522_p8 }
  0x1a   :  { %530 = shalt.err (!%p527_p10)
}
  0x1b   :  { %s531_s16 = scalar_lea.vmem %s21_s8, 256  ;;  %p536_p12 = scmp.lt.s32.totalorder %s21_s8, %s21_s8 }
  0x1c   :  { %p532_p11 = scmp.ne.s32.totalorder %s21_s8, %s531_s16  ;;  %p537_p13 = scmp.lt.s32.totalorder %s531_s16, %s531_s16 }
  0x1e   :  { %p538_p0 = por %p537_p13, %p536_p12 }
  0x20   :  { %p539_p1 = pnand %p538_p0, %p532_p11 }
  0x22   :  { %542 = shalt.err (!%p539_p1)
}
  0x23   :  { %s621_s2 = smov 128   ;;  %s622_s17 = smov 8  }
  0x24   :  { %26 = dma.hbm_to_vmem [thread:$0]  %s776_s1, 256, %s21_s8, [#allocation9], %s621_s2, %s621_s2, %s622_s17  }
  0x25   :  { %s623_s20 = smov [#allocation13]   ;;  %s624_s22 = smov [#allocation14]  }
  0x26   :  { %s44_s21 = sshll.u32 %s623_s20, 4  ;;  %s56_s23 = sshll.u32 %s624_s22, 4  ;;  %s45_s21 = int_to_ptr.vmem [resolvable:$true] %s44_s21  ;;  %s692_s23 = int_to_ptr.vmem [resolvable:$true] %s56_s23 }
  0x27   :  { %s543_s26 = scalar_lea.hbm %s778_s3, 128 }
  0x28   :  { %p544_p2 = scmp.ne.s32.totalorder %s778_s3, %s543_s26  ;;  %p547_p3 = scmp.lt.u32.totalorder %s543_s26, %s778_s3 }
  0x2a   :  { %p549_p4 = pnand %p547_p3, %p544_p2 }
  0x2c   :  { %552 = shalt.err (!%p549_p4)
}
  0x2d   :  { %s553_s1 = scalar_lea.vmem %s45_s21, 128  ;;  %p558_p6 = scmp.lt.s32.totalorder %s45_s21, %s45_s21 }
  0x2e   :  { %p554_p5 = scmp.ne.s32.totalorder %s45_s21, %s553_s1  ;;  %p559_p7 = scmp.lt.s32.totalorder %s553_s1, %s553_s1 }
  0x30   :  { %p560_p8 = por %p559_p7, %p558_p6 }
  0x32   :  { %p561_p9 = pnand %p560_p8, %p554_p5 }
  0x34   :  { %564 = shalt.err (!%p561_p9)
}
  0x35   :  { %50 = dma.hbm_to_vmem [thread:$0]  %s778_s3, 128, %s45_s21, [#allocation12], %s618_s28, %s618_s28, %s619_s29  }
  0x36   :  { %s565_s12 = scalar_lea.hbm %s779_s4, 128 }
  0x37   :  { %p566_p10 = scmp.ne.s32.totalorder %s779_s4, %s565_s12  ;;  %p569_p11 = scmp.lt.u32.totalorder %s565_s12, %s779_s4 }
  0x39   :  { %p571_p12 = pnand %p569_p11, %p566_p10 }
  0x3b   :  { %574 = shalt.err (!%p571_p12)
}
  0x3c   :  { %s575_s18 = scalar_lea.vmem %s692_s23, 128  ;;  %p580_p0 = scmp.lt.s32.totalorder %s692_s23, %s692_s23 }
  0x3d   :  { %p576_p13 = scmp.ne.s32.totalorder %s692_s23, %s575_s18  ;;  %p581_p1 = scmp.lt.s32.totalorder %s575_s18, %s575_s18 }
  0x3f   :  { %p582_p2 = por %p581_p1, %p580_p0 }
  0x41   :  { %p583_p3 = pnand %p582_p2, %p576_p13 }
  0x43   :  { %586 = shalt.err (!%p583_p3)
}
  0x44   :  { %62 = dma.hbm_to_vmem [thread:$0]  %s779_s4, 128, %s692_s23, [#allocation15], %s618_s28, %s618_s28, %s619_s29  }
  0x45   :  { %609 = dma.done.wait [#allocation9], 256  }
  0x46   :  { %610 = vsyncadd [#allocation9], 4294967040 }
  0x47   :  { %611 = dma.done.wait [#allocation12], 256  }
  0x48   :  { %612 = vsyncadd [#allocation12], 4294967040 }
  0x49   :  { %613 = dma.done.wait [#allocation15], 128  }
  0x4a   :  { %614 = vsyncadd [#allocation15], 4294967168  ;;  %vm91_vm0 = vcmask 7168   ;;  %v625_v0 = vmov -inf   ;;  %v626_v1 = vmov 0.0   ;;  %vm96_vm1 = vcmask 261120  }
  0x4b   :  { %92 = vst.msk [vmem:[#allocation3] sm:$0xff] %vm91_vm0, %v625_v0  ;;  %93 = vst.msk [vmem:[#allocation3 + $0x8] sm:$0xff] %vm91_vm0, %v625_v0  ;;  %v434_v2 = vld [vmem:[#allocation11] sm:$0xff]   ;;  %vm88_vm2 = vcmask 257024   ;;  %p428_p4 = scmp.le.s32.totalorder %s775_s0, 0 }
  0x4c   :  { %94 = vst.msk [vmem:[#allocation4] sm:$0xff] %vm91_vm0, %v626_v1  ;;  %95 = vst.msk [vmem:[#allocation4 + $0x8] sm:$0xff] %vm91_vm0, %v626_v1  ;;  %v435_v3 = vunpack.c.l.bf16 %v434_v2  ;;  %v436_v4 = vunpack.c.h.bf16 %v434_v2  ;;  %v108_v9 = vld [vmem:[#allocation13] sm:$0xf] (!%p428_p4)  ;;  %v109_v10 = vld [vmem:[#allocation13 + $0x4] sm:$0xf] (!%p428_p4)  ;;  %v203_v19 = vlaneseq (!%p428_p4) }
  0x4d   :  { %97 = vst.msk [vmem:[#allocation5] sm:$0xff] %vm96_vm1, %v626_v1  ;;  %98 = vst.msk [vmem:[#allocation5 + $0x8] sm:$0xff] %vm96_vm1, %v626_v1  ;;  %105 = sbr.rel (%p428_p4) target bundleno = 812 (0x32c), region = 41  ;;  %v627_v11 = vmov (!%p428_p4), 0.0   ;;  %v115_v12 = vsel (!%p428_p4), %vm96_vm1, %v108_v9, 0  ;;  %v161_v13 = vsel (!%p428_p4), %vm96_vm1, %v109_v10, 0 }
  0x4e   :  { %v84_v5 = vmul.f32 0.17677669, %v435_v3  ;;  %v85_v6 = vmul.f32 0.17677669, %v436_v4  ;;  %445 = vmatprep.subr.bf16.mxu0 (!%p428_p4), %v627_v11  ;;  %451 = vmatprep.subr.bf16.mxu1 (!%p428_p4), %v627_v11  ;;  %v207_v14 = vld [vmem:[#allocation8] sm:$0xff] (!%p428_p4)  ;;  %vm628_vm3 = vmmov (!%p428_p4), 0  }
  0x4f   :  { %446 = vmatpush3.bf16.xpose.msra.mxu0 (!%p428_p4), %v115_v12  ;;  %452 = vmatpush3.bf16.xpose.msra.mxu1 (!%p428_p4), %v161_v13  ;;  %v629_v15 = vmov (!%p428_p4), 0   ;;  %v208_v18 = vld [vmem:[#allocation8 + $0x8] sm:$0xff] (!%p428_p4)  ;;  %v204_v21 = vand.u32 (!%p428_p4), 127, %v203_v19  ;;  %vm221_vm5 = vcmask (!%p428_p4), 64512   ;;  %v283_v43 = vld [vmem:[#allocation14] sm:$0xf] (!%p428_p4) }
  0x50   :  { %v86_v7 = vpack.c.bf16 %v84_v5, %v84_v5  ;;  %v87_v8 = vpack.c.bf16 %v85_v6, %v85_v6  ;;  %447 = vmatprep.mubr.msk.bf16.mxu0 (!%p428_p4), %vm628_vm3, %v627_v11  ;;  %453 = vmatprep.mubr.msk.bf16.mxu1 (!%p428_p4), %vm628_vm3, %v627_v11  ;;  %vm288_vm7 = vcmask (!%p428_p4), 1043456   ;;  %v284_v44 = vld [vmem:[#allocation14 + $0x4] sm:$0xf] (!%p428_p4) }
  0x51   :  { %484 = vset.pattern.permute.xlu0 (!%p428_p4), %v629_v15  ;;  %485 = vset.pattern.permute.xlu1 (!%p428_p4), %v629_v15  ;;  %v290_v45 = vsel (!%p428_p4), %vm288_vm7, %v283_v43, 0  ;;  %v336_v46 = vsel (!%p428_p4), %vm288_vm7, %v284_v44, 0 }
  0x52   :  { %89 = vst.msk [vmem:[#allocation2] sm:$0xf] %vm88_vm2, %v86_v7  ;;  %90 = vst.msk [vmem:[#allocation2 + $0x4] sm:$0xf] %vm88_vm2, %v87_v8  ;;  %210 = vperm.xlu0 (!%p428_p4), %484, %v207_v14   ;;  %457 = vmatprep.subr.bf16.mxu0 (!%p428_p4), %v627_v11  ;;  %v219_v35 = vld [vmem:[#allocation3] sm:$0xff] (!%p428_p4)  ;;  %v220_v38 = vld [vmem:[#allocation3 + $0x8] sm:$0xff] (!%p428_p4) }
  0x53   :  { %463 = vmatprep.subr.bf16.mxu1 (!%p428_p4), %v627_v11  ;;  %v252_v63 = vld [vmem:[#allocation4] sm:$0xff] (!%p428_p4)  ;;  %v253_v2 = vld [vmem:[#allocation4 + $0x8] sm:$0xff] (!%p428_p4) }
  0x54   :  { %v267_v7 = vld [vmem:[#allocation5] sm:$0xff]  ;;  %v268_v10 = vld [vmem:[#allocation5 + $0x8] sm:$0xff] }
  0x56   :  { %213 = vperm.xlu0 %484, %v208_v18  }
  0x59   :  { %v106_v16 = vld [vmem:[#allocation2] sm:$0xf]  ;;  %v107_v17 = vld [vmem:[#allocation2 + $0x4] sm:$0xf] }
  0x5a   :  { %448 = vmatmul.mubr.msk.bf16.vlgmr.msra.gmra.mrb[0].mxu0 %vm96_vm1, %v106_v16  ;;  %454 = vmatmul.mubr.msk.bf16.vlgmr.msra.gmra.mrb[0].mxu1 %vm96_vm1, %v107_v17 }
  0x5b   :  { %459 = vmatprep.mubr.msk.bf16.mxu0 %vm628_vm3, %v627_v11  ;;  %465 = vmatprep.mubr.msk.bf16.mxu1 %vm628_vm3, %v627_v11 }
  0x5c   :  { %458 = vmatpush3.bf16.msra.mxu0 %v290_v45  ;;  %464 = vmatpush3.bf16.msra.mxu1 %v336_v46 }
  0xd1   :  { %v211_v20 = vpop.permute.xlu0 %210 }
  0xd2   :  { %vm215_vm4 = vcmp.lt.s32.totalorder %v204_v21, %v211_v20 }
  0xd5   :  { %v214_v22 = vpop.permute.xlu0 %213 }
  0xd6   :  { %vm216_vm6 = vcmp.lt.s32.totalorder %v204_v21, %v214_v22 }
 0x12d   :  { %v151_v23 = vpop.f32.mrb[0].mxu0  ;;  %v197_v24 = vpop.f32.mrb[0].mxu1 }
 0x12e   :  { %v217_v25 = vsel %vm215_vm4, %v151_v23, -1000000.0  ;;  %v449_v26 = vpop.f32.mrb[1].mxu0  ;;  %v455_v27 = vpop.f32.mrb[1].mxu1  ;;  %v218_v31 = vsel %vm216_vm6, %v197_v24, -1000000.0 }
 0x12f   :  { %v154_v28 = vpop.f32.mrb[2].mxu0  ;;  %v200_v29 = vpop.f32.mrb[2].mxu1  ;;  %v222_v30 = vsel %vm221_vm5, %v217_v25, -inf  ;;  %v225_v34 = vsel %vm221_vm5, %v218_v31, -inf }
 0x130   :  { %223 = vmax.xlane.f32.xlu1 %v222_v30  ;;  %v450_v32 = vpop.f32.mrb[3].mxu0  ;;  %v456_v33 = vpop.f32.mrb[3].mxu1 }
 0x134   :  { %226 = vmax.xlane.f32.xlu1 %v225_v34 }
 0x1bd   :  { %v224_v36 = vpop.xlane.xlu1 %223 }
 0x1be   :  { %v228_v37 = vmax.f32 %v219_v35, %v224_v36 }
 0x1c0   :  { %v230_v39 = vsub.f32 %v219_v35, %v228_v37  ;;  %382 = vst.msk [vmem:[#allocation3] sm:$0xff] %vm91_vm0, %v228_v37  ;;  %238 = vperm.xlu0 %484, %v228_v37  }
 0x1c1   :  { %v227_v40 = vpop.xlane.xlu1 %226 }
 0x1c2   :  { %v229_v41 = vmax.f32 %v220_v38, %v227_v40  ;;  %v232_v60 = vmul.f32 1.442695, %v230_v39 }
 0x1c4   :  { %v231_v42 = vsub.f32 %v220_v38, %v229_v41  ;;  %383 = vst.msk [vmem:[#allocation3 + $0x8] sm:$0xff] %vm91_vm0, %v229_v41  ;;  %243 = vperm.xlu1 %485, %v229_v41  }
 0x1c6   :  { %v234_v59 = vmul.f32 1.442695, %v231_v42 }
 0x23f   :  { %v239_v47 = vpop.permute.xlu0 %238 }
 0x240   :  { %v246_v48 = vsub.f32 %v217_v25, %v239_v47 }
 0x242   :  { %v248_v49 = vmul.f32 1.442695, %v246_v48 }
 0x243   :  { %v244_v50 = vpop.permute.xlu1 %243 }
 0x244   :  { %486 = vpow2.f32 %v248_v49  ;;  %v247_v51 = vsub.f32 %v218_v31, %v244_v50 }
 0x246   :  { %v250_v52 = vmul.f32 1.442695, %v247_v51 }
 0x248   :  { %488 = vpow2.f32 %v250_v52 }
 0x249   :  { %490 = vpow2.f32 %v234_v59 }
 0x24a   :  { %492 = vpow2.f32 %v232_v60 }
 0x24e   :  { %v487_v53 = vpop.eup %486 }
 0x24f   :  { %v256_v54 = vsel %vm221_vm5, %v487_v53, 0.0  ;;  %v281_v55 = vpack.c.bf16 %v487_v53, %v487_v53 }
 0x250   :  { %257 = vadd.xlane.f32.xlu0 %v256_v54 }
 0x251   :  { %460 = vmatmul.mubr.msk.bf16.vlgmr.msra.gmra.mrb[4].mxu0 %vm221_vm5, %v281_v55 }
 0x252   :  { %v489_v56 = vpop.eup %488 }
 0x253   :  { %v259_v57 = vsel %vm221_vm5, %v489_v56, 0.0  ;;  %v282_v58 = vpack.c.bf16 %v489_v56, %v489_v56  ;;  %v491_v61 = vpop.eup %490 }
 0x254   :  { %260 = vadd.xlane.f32.xlu1 %v259_v57  ;;  %v493_v62 = vpop.eup %492  ;;  %v255_v4 = vmul.f32 %v491_v61, %v253_v2 }
 0x255   :  { %466 = vmatmul.mubr.msk.bf16.vlgmr.msra.gmra.mrb[4].mxu1 %vm221_vm5, %v282_v58  ;;  %v254_v0 = vmul.f32 %v493_v62, %v252_v63 }
 0x265   :  { %276 = vperm.xlu1 %485, %v491_v61  }
 0x266   :  { %271 = vperm.xlu0 %484, %v493_v62  }
 0x2dd   :  { %v258_v1 = vpop.xlane.xlu0 %257 }
 0x2de   :  { %v262_v3 = vadd.f32 %v258_v1, %v254_v0 }
 0x2e0   :  { %265 = vst.msk [vmem:[#allocation4] sm:$0xff] %vm91_vm0, %v262_v3 }
 0x2e1   :  { %v261_v5 = vpop.xlane.xlu1 %260 }
 0x2e2   :  { %v263_v6 = vadd.f32 %v261_v5, %v255_v4 }
 0x2e4   :  { %266 = vst.msk [vmem:[#allocation4 + $0x8] sm:$0xff] %vm91_vm0, %v263_v6 }
 0x2e5   :  { %v272_v8 = vpop.permute.xlu0 %271  ;;  %v277_v11 = vpop.permute.xlu1 %276 }
 0x2e6   :  { %v279_v9 = vmul.f32 %v272_v8, %v267_v7  ;;  %v280_v16 = vmul.f32 %v277_v11, %v268_v10 }
 0x324   :  { %v326_v12 = vpop.f32.mrb[4].mxu0 }
 0x325   :  { %v378_v13 = vadd.f32 %v326_v12, %v279_v9  ;;  %v461_v14 = vpop.f32.mrb[5].mxu0 }
 0x326   :  { %v329_v15 = vpop.f32.mrb[6].mxu0 }
 0x327   :  { %380 = vst.msk [vmem:[#allocation5] sm:$0xff] %vm96_vm1, %v378_v13  ;;  %v462_v17 = vpop.f32.mrb[7].mxu0 }
 0x328   :  { %v372_v18 = vpop.f32.mrb[4].mxu1 }
 0x329   :  { %v379_v19 = vadd.f32 %v372_v18, %v280_v16  ;;  %v467_v20 = vpop.f32.mrb[5].mxu1 }
 0x32a   :  { %v375_v21 = vpop.f32.mrb[6].mxu1 }
 0x32b   :  { %381 = vst.msk [vmem:[#allocation5 + $0x8] sm:$0xff] %vm96_vm1, %v379_v19  ;;  %v468_v22 = vpop.f32.mrb[7].mxu1 }
 0x32c PF:  { %v389_v23 = vld [vmem:[#allocation4] sm:$0xff]  ;;  %v630_v24 = vmov 0   ;;  %v390_v25 = vld [vmem:[#allocation4 + $0x8] sm:$0xff]  ;;  %s631_s0 = smov [#allocation16]  }
 0x32d   :  { %494 = vset.pattern.permute.xlu0 %v630_v24  ;;  %s413_s29 = sshll.u32 %s631_s0, 4  ;;  %s414_s29 = int_to_ptr.vmem [resolvable:$true] %s413_s29 }
 0x32e   :  { %393 = vperm.xlu0 %494, %v389_v23   ;;  %v387_v28 = vld [vmem:[#allocation5] sm:$0xff]  ;;  %s587_s20 = scalar_lea.vmem %s414_s29, 256  ;;  %p592_p6 = scmp.lt.s32.totalorder %s414_s29, %s414_s29 }
 0x32f   :  { %p588_p5 = scmp.ne.s32.totalorder %s414_s29, %s587_s20  ;;  %p593_p7 = scmp.lt.s32.totalorder %s587_s20, %s587_s20 }
 0x331   :  { %p594_p8 = por %p593_p7, %p592_p6 }
 0x332   :  { %398 = vperm.xlu0 %494, %v390_v25   ;;  %v388_v31 = vld [vmem:[#allocation5 + $0x8] sm:$0xff] }
 0x333   :  { %p595_p9 = pnand %p594_p8, %p588_p5 }
 0x3ad   :  { %v394_v26 = vpop.permute.xlu0 %393 }
 0x3ae   :  { %495 = vrcp.f32 %v394_v26 }
 0x3b1   :  { %v399_v27 = vpop.permute.xlu0 %398 }
 0x3b2   :  { %497 = vrcp.f32 %v399_v27 }
 0x3b8   :  { %v496_v29 = vpop.eup %495 }
 0x3b9   :  { %v402_v30 = vmul.f32 %v496_v29, %v387_v28 }
 0x3bb   :  { %406 = vst.msk [vmem:[#allocation16] sm:$0xff] %vm96_vm1, %v402_v30 }
 0x3bc   :  { %v498_v32 = vpop.eup %497 }
 0x3bd   :  { %v404_v33 = vmul.f32 %v498_v32, %v388_v31 }
 0x3bf   :  { %407 = vst.msk [vmem:[#allocation16 + $0x8] sm:$0xff] %vm96_vm1, %v404_v33 }
 0x3c0   :  { %598 = shalt.err (!%p595_p9)
}
 0x3c1   :  { %s599_s23 = scalar_lea.hbm %s780_s5, 256 }
 0x3c2   :  { %p600_p10 = scmp.ne.s32.totalorder %s780_s5, %s599_s23  ;;  %p603_p11 = scmp.lt.u32.totalorder %s599_s23, %s780_s5 }
 0x3c4   :  { %p605_p12 = pnand %p603_p11, %p600_p10 }
 0x3c6   :  { %608 = shalt.err (!%p605_p12)
}
 0x3c7   :  { %419 = dma.vmem_to_hbm [thread:$0]  %s414_s29, 256, %s780_s5, [#allocation10], %s621_s2, %s621_s2, %s622_s17  }
 0x3c8   :  { %615 = dma.done.wait [#allocation10], 256  }
 0x3c9   :  { %616 = vsyncadd [#allocation10], 4294967040 }
 0x3ca   :  { %423 = vsyncpa [#allocation9], 1 }
 0x3cb   :  { %424 = vsyncpa [#allocation12], 1 }
 0x3cc   :  { %425 = vsyncpa [#allocation15], 1 }
 0x3cd   :  { %426 = vsyncpa [#allocation10], 1 }

</bundles_post_ra>
